<compile_context>
chip_gen: v6e
topology: v6e:2x2x1
jax: 0.10.0
libtpu: 0.0.40
codegen_flags: <defaults>
</compile_context>

<pallas_src>
import functools

import jax
import jax.numpy as jnp
from jax.experimental import pallas as pl
from jax.experimental.pallas import tpu as pltpu

_MAX_UNROLL = 32  # max statically-unrolled per-agent adds inside one grid step


def _agent_chunk(x_ref, j: int, lanes: int, flat: bool):
    """Return agent j's (tb, lanes) chunk from the current input block."""
    if flat:
        return x_ref[:, j * lanes:(j + 1) * lanes]   # lane-aligned static slice
    return x_ref[:, j, :]                            # static sublane-dim index


def _pool_single_kernel(x_ref, o_ref, *, n_agents: int, lanes: int, flat: bool):
    """All agents in one block: plain f32 VPU add chain + final scale."""
    acc = _agent_chunk(x_ref, 0, lanes, flat).astype(jnp.float32)
    for j in range(1, n_agents):
        acc = acc + _agent_chunk(x_ref, j, lanes, flat).astype(jnp.float32)
    o_ref[...] = (acc * (1.0 / n_agents)).astype(o_ref.dtype)


def _pool_reduce_kernel(x_ref, o_ref, acc_ref, *, n_agents: int,
                        agents_per_block: int, lanes: int, flat: bool):
    """Agent axis split over grid axis 1 (reduction): accumulate in f32 scratch."""
    a_idx = pl.program_id(1)

    @pl.when(a_idx == 0)
    def _():
        acc_ref[...] = jnp.zeros_like(acc_ref)

    a_base = a_idx * agents_per_block
    rem = n_agents % agents_per_block
    acc = acc_ref[...]
    for j in range(agents_per_block):
        chunk = _agent_chunk(x_ref, j, lanes, flat).astype(jnp.float32)
        # Only the ragged last agent-block can contain invalid rows, and only
        # for j >= rem — prune the mask statically everywhere else.
        if rem != 0 and j >= rem:
            chunk = jnp.where(a_base + j < n_agents, chunk, 0.0)
        acc = acc + chunk
    acc_ref[...] = acc

    @pl.when(a_idx == pl.num_programs(1) - 1)
    def _():
        o_ref[...] = (acc_ref[...] * (1.0 / n_agents)).astype(o_ref.dtype)


def _tpu_vmem_capacity_bytes() -> int:
    """Physical per-core VMEM; conservative fallback if the query fails."""
    try:
        cap = int(getattr(pltpu.get_tpu_info(), "vmem_capacity_bytes", 0))
        if cap > 0:
            return cap
    except Exception:
        pass
    return 64 * 1024 * 1024  # v7x per-TensorCore VMEM (smallest current gen)


def entity_pooling_forward(entities: jax.Array) -> jax.Array:
    """Pallas equivalent of EntityPoolingLayer.forward (mean over dim=2).

    Args:
        entities: [B, T, A, E, D] array.
    Returns:
        [B, T, E, D] array.
    """
    B, T, A, E, D = entities.shape
    BT, L = B * T, E * D
    itemsize = jnp.dtype(entities.dtype).itemsize

    # --- per-generation VMEM / tile budgets -------------------------------
    vmem_cap = _tpu_vmem_capacity_bytes()
    # Scoped limit ~half of physical VMEM: 64 MiB on v5e/v6e (128 MiB phys),
    # 32 MiB on v7x (64 MiB phys).  Always set explicitly (v5e default is 16 MiB).
    vmem_limit = int(max(16 * 1024 * 1024, min(vmem_cap // 2, 64 * 1024 * 1024)))
    # Input-tile budget per grid step (double-buffered in + out + scratch must fit).
    target_in = int(max(2 * 1024 * 1024, min(12 * 1024 * 1024, vmem_limit // 5)))

    lane_aligned = (L % 128 == 0)
    row_bytes = A * L * itemsize

    # --- agent-axis tiling -------------------------------------------------
    if A <= _MAX_UNROLL and 8 * row_bytes <= target_in:
        ta = A                                     # whole agent axis per step
    else:
        ta = (target_in // max(8 * L * itemsize, 1)) // 8 * 8
        ta = int(max(8, min(_MAX_UNROLL, ta)))
        if ta >= A:                                # tiny A with huge L: one pass
            ta = A
    a_blocks = int(pl.cdiv(A, ta))
    single_pass = (ta == A)

    # --- BT-axis tiling (rows per step, multiple of 8) ----------------------
    tb = (target_in // max(ta * L * itemsize, 1)) // 8 * 8
    tb = int(max(8, min(tb, ((BT + 7) // 8) * 8)))
    bt_blocks = int(pl.cdiv(BT, tb))

    # --- free reshapes only (no pads, no extra HBM traffic) -----------------
    if lane_aligned:
        x = entities.reshape(BT, A * L)
        if single_pass:
            in_spec = pl.BlockSpec((tb, A * L), lambda i: (i, 0))
        else:
            in_spec = pl.BlockSpec((tb, ta * L), lambda i, a: (i, a))
    else:
        x = entities.reshape(BT, A, L)
        if single_pass:
            in_spec = pl.BlockSpec((tb, A, L), lambda i: (i, 0, 0))
        else:
            in_spec = pl.BlockSpec((tb, ta, L), lambda i, a: (i, a, 0))

    cost = pl.CostEstimate(
        flops=BT * A * L + BT * L,
        transcendentals=0,
        bytes_accessed=(BT * A * L + BT * L) * itemsize,
    )

    if single_pass:
        out = pl.pallas_call(
            functools.partial(_pool_single_kernel,
                              n_agents=A, lanes=L, flat=lane_aligned),
            out_shape=jax.ShapeDtypeStruct((BT, L), entities.dtype),
            grid=(bt_blocks,),
            in_specs=[in_spec],
            out_specs=pl.BlockSpec((tb, L), lambda i: (i, 0)),
            compiler_params=pltpu.CompilerParams(
                dimension_semantics=("parallel",),   # megacore-shardable on v7x
                vmem_limit_bytes=vmem_limit,
            ),
            cost_estimate=cost,
        )(x)
    else:
        out = pl.pallas_call(
            functools.partial(_pool_reduce_kernel, n_agents=A,
                              agents_per_block=ta, lanes=L, flat=lane_aligned),
            out_shape=jax.ShapeDtypeStruct((BT, L), entities.dtype),
            grid=(bt_blocks, a_blocks),              # reduction axis last
            in_specs=[in_spec],
            out_specs=pl.BlockSpec((tb, L), lambda i, a: (i, 0)),
            scratch_shapes=[pltpu.VMEM((tb, L), jnp.float32)],
            compiler_params=pltpu.CompilerParams(
                dimension_semantics=("parallel", "arbitrary"),
                vmem_limit_bytes=vmem_limit,
            ),
            cost_estimate=cost,
        )(x)

    return out.reshape(B, T, E, D)


if __name__ == "__main__":
    key = jax.random.PRNGKey(0)
    k0, k1 = jax.random.split(key)

    # Primary small shapes consistent with the module's forward:
    # batch=2, time=3, n_agents=4, n_entities=8, embed_dim=32.
    B, T, A, E, D = 2, 3, 4, 8, 32
    entities = jax.random.normal(k0, (B, T, A, E, D), dtype=jnp.float32)
    pooled = entity_pooling_forward(entities)
    jax.block_until_ready(pooled)
    ref = jnp.mean(entities, axis=2)
    assert pooled.shape == (B, T, E, D), pooled.shape
    assert jnp.allclose(pooled, ref, atol=1e-5, rtol=1e-5), "mismatch (single-pass path)"

    # Second small config exercising the robustness paths: large A (> unroll
    # cap) -> agent-reduction grid axis with masking, non-128-multiple E*D,
    # and a ragged BT tail (Pallas-clipped blocks instead of wrapper pads).
    B2, T2, A2, E2, D2 = 1, 2, 40, 3, 20
    entities2 = jax.random.normal(k1, (B2, T2, A2, E2, D2), dtype=jnp.float32)
    pooled2 = entity_pooling_forward(entities2)
    jax.block_until_ready(pooled2)
    ref2 = jnp.mean(entities2, axis=2)
    assert pooled2.shape == (B2, T2, E2, D2), pooled2.shape
    assert jnp.allclose(pooled2, ref2, atol=1e-5, rtol=1e-5), "mismatch (reduction path)"

    print("KERNEL_OK")
</pallas_src>

<mosaic_0001>
module attributes {stable_mosaic.version = 11 : i64} {
  func.func @_pool_single_kernel(%arg0: i32, %arg1: memref<8x1024xf32, #tpu.memory_space<vmem>>, %arg2: memref<8x256xf32, #tpu.memory_space<vmem>>) attributes {dimension_semantics = [#tpu.dimension_semantics<parallel>], iteration_bounds = array<i64: 1>, scalar_prefetch = 0 : i64, scratch_operands = 0 : i64, tpu.core_type = #tpu.core_type<tc>, window_params = [{transform_indices = @transform_0, window_bounds = array<i64: 8, 1024>}, {transform_indices = @transform_1, window_bounds = array<i64: 8, 256>}]} {
    %c0 = arith.constant 0 : index
    %c0_0 = arith.constant 0 : index
    %0 = vector.load %arg1[%c0, %c0_0] : memref<8x1024xf32, #tpu.memory_space<vmem>>, vector<8x256xf32>
    %c0_1 = arith.constant 0 : index
    %c256 = arith.constant 256 : index
    %1 = vector.load %arg1[%c0_1, %c256] : memref<8x1024xf32, #tpu.memory_space<vmem>>, vector<8x256xf32>
    %2 = arith.addf %0, %1 : vector<8x256xf32>
    %c0_2 = arith.constant 0 : index
    %c512 = arith.constant 512 : index
    %3 = vector.load %arg1[%c0_2, %c512] : memref<8x1024xf32, #tpu.memory_space<vmem>>, vector<8x256xf32>
    %4 = arith.addf %2, %3 : vector<8x256xf32>
    %c0_3 = arith.constant 0 : index
    %c768 = arith.constant 768 : index
    %5 = vector.load %arg1[%c0_3, %c768] : memref<8x1024xf32, #tpu.memory_space<vmem>>, vector<8x256xf32>
    %6 = arith.addf %4, %5 : vector<8x256xf32>
    %cst = arith.constant 2.500000e-01 : f32
    %7 = vector.broadcast %cst : f32 to vector<8x256xf32>
    %8 = arith.mulf %6, %7 : vector<8x256xf32>
    %c0_4 = arith.constant 0 : index
    %c0_5 = arith.constant 0 : index
    %9 = vector.load %arg2[%c0_4, %c0_5] : memref<8x256xf32, #tpu.memory_space<vmem>>, vector<8x256xf32>
    tpu.vector_store %arg2[%c0_4, %c0_5], %8 {strides = array<i32>} : memref<8x256xf32, #tpu.memory_space<vmem>>, vector<8x256xf32>,
    return
  }
  func.func @transform_0(%arg0: i32) -> (i32, i32) {
    %c0_i32 = arith.constant 0 : i32
    %c0_i32_0 = arith.constant 0 : i32
    return %arg0, %c0_i32 : i32, i32
  }
  func.func @transform_1(%arg0: i32) -> (i32, i32) {
    %c0_i32 = arith.constant 0 : i32
    %c0_i32_0 = arith.constant 0 : i32
    return %arg0, %c0_i32 : i32, i32
  }
}

</mosaic_0001>

<bundles_post_ra>
// kernel: tpu_custom_call.1
= control target key start
LH: loop header
LB: loop body
LE: loop exit
PB: predicated region body
PF: predicated region fallthrough
CT: control target
= control target key end

     0   :  { %6 = vsyncpa [#allocation3], 0  ;;  %s118_s0 = inlined_call_operand.hbm [shape: f32[6,1024], index: 0, kind: input, shape index: {}]   ;;  %s119_s1 = inlined_call_operand.hbm [shape: f32[6,256], index: 1, kind: output, shape index: {}]  }
   0x1   :  { %7 = vsyncpa [#allocation4], 0  ;;  %s100_s6 = smov [#allocation2]  }
   0x2   :  { %s14_s7 = sshll.u32 %s100_s6, 4  ;;  %s15_s7 = int_to_ptr.vmem [resolvable:$true] %s14_s7 }
   0x3   :  { %s64_s8 = scalar_lea.vmem %s15_s7, 1024  ;;  %p69_p1 = scmp.lt.s32.totalorder %s15_s7, %s15_s7 }
   0x4   :  { %p65_p0 = scmp.ne.s32.totalorder %s15_s7, %s64_s8  ;;  %p70_p2 = scmp.lt.s32.totalorder %s64_s8, %s64_s8 }
   0x6   :  { %p71_p3 = por %p70_p2, %p69_p1 }
   0x8   :  { %p72_p4 = pnand %p71_p3, %p65_p0 }
   0xa   :  { %75 = shalt.err (!%p72_p4)
}
   0xb   :  { %17 = dma.hbm_to_vmem [thread:$0]  %s118_s0, 1024, %s15_s7, [#allocation3]  }
   0xc   :  { %96 = dma.done.wait [#allocation3], 1024  }
   0xd   :  { %97 = vsyncadd [#allocation3], 4294966272  ;;  %v21_v0 = vld [vmem:[#allocation2] sm:$0xff]  ;;  %v23_v1 = vld [vmem:[#allocation2 + $0x10] sm:$0xff]  ;;  %s101_s11 = smov [#allocation5]  }
   0xe   :  { %v27_v2 = vld [vmem:[#allocation2 + $0x20] sm:$0xff]  ;;  %v25_v3 = vadd.f32 %v23_v1, %v21_v0  ;;  %v22_v4 = vld [vmem:[#allocation2 + $0x8] sm:$0xff]  ;;  %v24_v5 = vld [vmem:[#allocation2 + $0x18] sm:$0xff]  ;;  %s45_s12 = sshll.u32 %s101_s11, 4  ;;  %s46_s12 = int_to_ptr.vmem [resolvable:$true] %s45_s12 }
   0xf   :  { %v31_v6 = vld [vmem:[#allocation2 + $0x30] sm:$0xff]  ;;  %v26_v7 = vadd.f32 %v24_v5, %v22_v4  ;;  %v28_v8 = vld [vmem:[#allocation2 + $0x28] sm:$0xff]  ;;  %v32_v10 = vld [vmem:[#allocation2 + $0x38] sm:$0xff]  ;;  %s76_s0 = scalar_lea.vmem %s46_s12, 256  ;;  %p81_p6 = scmp.lt.s32.totalorder %s46_s12, %s46_s12 }
  0x10   :  { %v29_v9 = vadd.f32 %v27_v2, %v25_v3  ;;  %p77_p5 = scmp.ne.s32.totalorder %s46_s12, %s76_s0  ;;  %p82_p7 = scmp.lt.s32.totalorder %s76_s0, %s76_s0 }
  0x11   :  { %v30_v11 = vadd.f32 %v28_v8, %v26_v7 }
  0x12   :  { %v33_v12 = vadd.f32 %v31_v6, %v29_v9  ;;  %p83_p8 = por %p82_p7, %p81_p6 }
  0x13   :  { %v34_v13 = vadd.f32 %v32_v10, %v30_v11 }
  0x14   :  { %v35_v14 = vmul.f32 0.25, %v33_v12  ;;  %p84_p9 = pnand %p83_p8, %p77_p5 }
  0x15   :  { %v36_v15 = vmul.f32 0.25, %v34_v13 }
  0x16   :  { %37 = vst [vmem:[#allocation5] sm:$0xff] %v35_v14 }
  0x17   :  { %38 = vst [vmem:[#allocation5 + $0x8] sm:$0xff] %v36_v15 }
  0x18   :  { %87 = shalt.err (!%p84_p9)
}
  0x19   :  { %48 = dma.vmem_to_hbm [thread:$0]  %s46_s12, 256, %s119_s1, [#allocation4]  }
  0x1a   :  { %98 = dma.done.wait [#allocation4], 256  }
  0x1b   :  { %99 = vsyncadd [#allocation4], 4294967040 }
  0x1c   :  { %52 = vsyncpa [#allocation3], 1 }
  0x1d   :  { %53 = vsyncpa [#allocation4], 1 }

</bundles_post_ra>
